<compile_context>
chip_gen: v6e
topology: v6e:2x2x1
jax: 0.10.0
libtpu: 0.0.40
codegen_flags: <defaults>
</compile_context>

<pallas_src>
import jax
import jax.numpy as jnp
from jax import lax
from jax.experimental import pallas as pl
from jax.experimental.pallas import tpu as pltpu


def _round_up(x, m):
    return (x + m - 1) // m * m


# ---------------------------------------------------------------------------
# Kernel
# ---------------------------------------------------------------------------
def _critic_kernel(
    obs_ref, act_ref,
    wt_ref, bt_ref, ln_g_ref, ln_b_ref,
    w0h_ref, w0a_ref, b0_ref, w1_ref, b1_ref, w2_ref, b2_ref,
    q_ref,
):
    # obs / act and all matmul weights are bf16: every dot is a native
    # bf16 x bf16 -> f32 MXU matmul.  All VPU/EUP math is f32.
    obs = obs_ref[...]                      # (tile, repr_dim)   bf16
    act = act_ref[...]                      # (tile, action_dim) bf16

    # ---- trunk: Linear -> LayerNorm -> Tanh (f32 math) ----
    h = jnp.dot(obs, wt_ref[...], preferred_element_type=jnp.float32) + bt_ref[...]
    mean = jnp.mean(h, axis=-1, keepdims=True)
    # single-pass variance: E[h^2] - mean^2; clamp against f32 cancellation
    var = jnp.mean(h * h, axis=-1, keepdims=True) - mean * mean
    var = jnp.maximum(var, 0.0)
    h = (h - mean) * lax.rsqrt(var + 1e-5)
    h = jnp.tanh(h * ln_g_ref[...] + ln_b_ref[...])
    h = h.astype(jnp.bfloat16)              # back to bf16 for the next dot

    # ---- fused Q1/Q2 MLP ----
    # concat([h, action]) realized as split first-layer matmuls; both heads run
    # as one 2H-wide matmul chain (block-diagonal second layer, (2H, 2) head).
    z = (jnp.dot(h, w0h_ref[...], preferred_element_type=jnp.float32)
         + jnp.dot(act, w0a_ref[...], preferred_element_type=jnp.float32)
         + b0_ref[...])
    z = jnp.maximum(z, 0.0).astype(jnp.bfloat16)
    z = jnp.dot(z, w1_ref[...], preferred_element_type=jnp.float32) + b1_ref[...]
    z = jnp.maximum(z, 0.0).astype(jnp.bfloat16)
    q_ref[...] = jnp.dot(z, w2_ref[...], preferred_element_type=jnp.float32) + b2_ref[...]


# ---------------------------------------------------------------------------
# Weight packing: per-head params -> fused wide/block-diagonal bf16 weights
# ---------------------------------------------------------------------------
def _pack_fused_params(p):
    hid = p["q1_w1"].shape[0]
    bf16 = jnp.bfloat16
    w0h = jnp.concatenate([p["q1_w0h"], p["q2_w0h"]], axis=1).astype(bf16)  # (feat, 2H)
    w0a = jnp.concatenate([p["q1_w0a"], p["q2_w0a"]], axis=1).astype(bf16)  # (act,  2H)
    b0 = jnp.concatenate([p["q1_b0"], p["q2_b0"]], axis=1)                  # (1, 2H) f32
    w1 = jnp.zeros((2 * hid, 2 * hid), jnp.float32)                         # block-diag
    w1 = w1.at[:hid, :hid].set(p["q1_w1"]).at[hid:, hid:].set(p["q2_w1"]).astype(bf16)
    b1 = jnp.concatenate([p["q1_b1"], p["q2_b1"]], axis=1)                  # (1, 2H) f32
    w2 = jnp.zeros((2 * hid, 2), jnp.float32)                               # (2H, 2)
    w2 = w2.at[:hid, 0:1].set(p["q1_w2"]).at[hid:, 1:2].set(p["q2_w2"]).astype(bf16)
    b2 = jnp.concatenate([p["q1_b2"], p["q2_b2"]], axis=1)                  # (1, 2) f32
    return [p["wt"].astype(bf16), p["bt"], p["ln_g"], p["ln_b"],
            w0h, w0a, b0, w1, b1, w2, b2]


# ---------------------------------------------------------------------------
# Tiling policy
# ---------------------------------------------------------------------------
def _device_policy():
    """(vmem_budget_bytes, two_cores) per TPU generation; conservative fallback."""
    kind = ""
    try:
        kind = jax.devices()[0].device_kind.lower()
    except Exception:
        pass
    if "v7" in kind:
        return 16 << 20, True     # 64 MiB physical / 32 MiB default scope, 2 TCs
    if "v6" in kind:
        return 16 << 20, False    # half of the 32 MiB default scope
    return 8 << 20, False         # v5e (16 MiB default scope) / unknown


def _pick_batch_tile(B, repr_dim, action_dim, feature_dim, hidden2,
                     in_bytes, vmem_budget, two_cores):
    """Largest tile whose real per-step footprint fits the budget.

    Single-core parts (v5e/v6e): prefer one big step (per-step overhead
    ~0.35us dominates at these tiny feature dims).  Two-core parts (v7x):
    whenever the work is split, force an even step count so megacore
    sharding is balanced."""
    b16 = _round_up(B, 16)

    def footprint(t):
        streams = 2 * t * (repr_dim + action_dim) * in_bytes        # 2x-buffered bf16 in
        out = 2 * t * 2 * 4                                         # 2x-buffered f32 out
        # lane-padded f32 intermediates: h (feature_dim) + two live z's (2H)
        interm = t * 4 * (_round_up(feature_dim, 128) + 2 * _round_up(hidden2, 128))
        return streams + out + interm

    tile = max(16, _round_up(min(b16, 4096), 16))
    while tile > 16 and footprint(tile) > vmem_budget:
        tile = max(16, _round_up(tile // 2, 16))

    if two_cores:
        steps = -(-b16 // tile)
        if steps == 1 and b16 >= 32:
            steps = 2                       # give both TensorCores work
        elif steps > 1 and steps % 2 == 1:
            steps += 1                      # balanced megacore split
        tile = max(16, _round_up(-(-b16 // steps), 16))
        while tile > 16 and footprint(tile) > vmem_budget:
            steps += 2
            tile = max(16, _round_up(-(-b16 // steps), 16))
    return tile


# ---------------------------------------------------------------------------
# Wrapper
# ---------------------------------------------------------------------------
def state_critic_forward(obs, action, params, *, batch_tile=None):
    B, repr_dim = obs.shape
    _, action_dim = action.shape
    feature_dim = params["wt"].shape[1]
    hidden_dim = params["q1_w1"].shape[0]

    weights = _pack_fused_params(params)

    in_bytes = obs.dtype.itemsize
    vmem_budget, two_cores = _device_policy()
    if batch_tile is None:
        batch_tile = _pick_batch_tile(B, repr_dim, action_dim, feature_dim,
                                      2 * hidden_dim, in_bytes,
                                      vmem_budget, two_cores)
    batch_tile = max(16, _round_up(batch_tile, 16))
    batch_tile = min(batch_tile, _round_up(B, 16))

    # Ragged batch: zero-pad rows (LayerNorm/tanh of zero rows is finite) and
    # slice the result back below.
    B_pad = _round_up(B, batch_tile)
    if B_pad != B:
        obs = jnp.pad(obs, ((0, B_pad - B), (0, 0)))
        action = jnp.pad(action, ((0, B_pad - B), (0, 0)))

    grid = (B_pad // batch_tile,)

    def batch_spec(feat):
        return pl.BlockSpec((batch_tile, feat), lambda i: (i, 0))

    def full_spec(arr):
        # whole (small) parameter resident in VMEM for every batch tile.
        # (Constant index_map -> the pipeline never re-fetches it.)
        return pl.BlockSpec(arr.shape, lambda i: (0,) * arr.ndim)

    # Advisory cost estimate so XLA can schedule around the custom call.
    flops = 2 * B_pad * (repr_dim * feature_dim
                         + feature_dim * 2 * hidden_dim
                         + action_dim * 2 * hidden_dim
                         + (2 * hidden_dim) * (2 * hidden_dim)
                         + (2 * hidden_dim) * 2)
    bytes_accessed = int(obs.size * obs.dtype.itemsize
                         + action.size * action.dtype.itemsize
                         + sum(w.size * w.dtype.itemsize for w in weights)
                         + B_pad * 2 * 4)
    cost = pl.CostEstimate(flops=int(flops),
                           transcendentals=int(B_pad * feature_dim + B_pad),
                           bytes_accessed=bytes_accessed)

    q = pl.pallas_call(
        _critic_kernel,
        out_shape=jax.ShapeDtypeStruct((B_pad, 2), jnp.float32),
        grid_spec=pltpu.PrefetchScalarGridSpec(
            num_scalar_prefetch=0,
            grid=grid,
            in_specs=[batch_spec(repr_dim), batch_spec(action_dim)]
                     + [full_spec(w) for w in weights],
            out_specs=pl.BlockSpec((batch_tile, 2), lambda i: (i, 0)),
        ),
        compiler_params=pltpu.CompilerParams(
            dimension_semantics=("parallel",),
            vmem_limit_bytes=32 << 20),
        cost_estimate=cost,
    )(obs, action, *weights)

    return q[:B, 0:1], q[:B, 1:2]


# ---------------------------------------------------------------------------
# Synthetic parameters + pure-JAX reference
# ---------------------------------------------------------------------------
def init_params(key, repr_dim, feature_dim, action_dim, hidden_dim):
    """Deterministic synthetic parameters (not a checkpoint load).
    Linear weights stored as (in_features, out_features); biases as (1, out)."""
    keys = jax.random.split(key, 12)

    def lin(k, n_in, n_out, scale=0.1):
        return scale * jax.random.normal(k, (n_in, n_out), jnp.float32)

    p = {}
    p["wt"] = lin(keys[0], repr_dim, feature_dim)
    p["bt"] = jnp.zeros((1, feature_dim), jnp.float32)
    p["ln_g"] = jnp.ones((1, feature_dim), jnp.float32)
    p["ln_b"] = jnp.zeros((1, feature_dim), jnp.float32)
    p["q1_w0h"] = lin(keys[1], feature_dim, hidden_dim)
    p["q1_w0a"] = lin(keys[2], action_dim, hidden_dim)
    p["q1_b0"] = 0.01 * jnp.ones((1, hidden_dim), jnp.float32)
    p["q1_w1"] = lin(keys[3], hidden_dim, hidden_dim)
    p["q1_b1"] = 0.01 * jnp.ones((1, hidden_dim), jnp.float32)
    p["q1_w2"] = lin(keys[4], hidden_dim, 1)
    p["q1_b2"] = jnp.zeros((1, 1), jnp.float32)
    p["q2_w0h"] = lin(keys[5], feature_dim, hidden_dim)
    p["q2_w0a"] = lin(keys[6], action_dim, hidden_dim)
    p["q2_b0"] = 0.01 * jnp.ones((1, hidden_dim), jnp.float32)
    p["q2_w1"] = lin(keys[7], hidden_dim, hidden_dim)
    p["q2_b1"] = 0.01 * jnp.ones((1, hidden_dim), jnp.float32)
    p["q2_w2"] = lin(keys[8], hidden_dim, 1)
    p["q2_b2"] = jnp.zeros((1, 1), jnp.float32)
    return p


def reference_forward(obs, action, p):
    """Pure-JAX reference matching the PyTorch forward (fc_layer_norm_for_obs=True)."""
    h = obs @ p["wt"] + p["bt"]
    mean = jnp.mean(h, -1, keepdims=True)
    var = jnp.mean((h - mean) ** 2, -1, keepdims=True)
    h = (h - mean) / jnp.sqrt(var + 1e-5) * p["ln_g"] + p["ln_b"]
    h = jnp.tanh(h)
    ha = jnp.concatenate([h, action], -1)

    def q(prefix):
        w0 = jnp.concatenate([p[prefix + "_w0h"], p[prefix + "_w0a"]], 0)
        z = jnp.maximum(ha @ w0 + p[prefix + "_b0"], 0.0)
        z = jnp.maximum(z @ p[prefix + "_w1"] + p[prefix + "_b1"], 0.0)
        return z @ p[prefix + "_w2"] + p[prefix + "_b2"]

    return q("q1"), q("q2")


if __name__ == "__main__":
    # Small shapes implied by the module.
    B = 8
    repr_dim = 64       # obs / repr dim
    feature_dim = 32    # trunk output
    action_dim = 8      # action_shape[0]
    hidden_dim = 32     # hidden_depth = 2 baked into kernel structure

    key = jax.random.PRNGKey(0)
    k_obs, k_act, k_par = jax.random.split(key, 3)
    obs = jax.random.normal(k_obs, (B, repr_dim), jnp.float32)
    action = jax.random.normal(k_act, (B, action_dim), jnp.float32)
    params = init_params(k_par, repr_dim, feature_dim, action_dim, hidden_dim)

    # Feed bf16 batch streams (halves HBM traffic); matmul weights are packed
    # to bf16 inside the wrapper so every dot is a native bf16 MXU matmul with
    # f32 accumulation; LayerNorm / tanh / ReLU math stays f32.
    obs_bf = obs.astype(jnp.bfloat16)
    act_bf = action.astype(jnp.bfloat16)

    q1, q2 = state_critic_forward(obs_bf, act_bf, params)
    q1 = jax.block_until_ready(q1)
    q2 = jax.block_until_ready(q2)

    # Reference sees the same bf16-rounded inputs and bf16-rounded matmul
    # weights (in f32), so the only remaining delta is intermediate rounding.
    _bf_weight_keys = ("wt", "q1_w0h", "q1_w0a", "q1_w1", "q1_w2",
                       "q2_w0h", "q2_w0a", "q2_w1", "q2_w2")
    params_bf = {k: (v.astype(jnp.bfloat16).astype(jnp.float32)
                     if k in _bf_weight_keys else v)
                 for k, v in params.items()}
    r1, r2 = reference_forward(obs_bf.astype(jnp.float32),
                               act_bf.astype(jnp.float32), params_bf)
    assert q1.shape == (B, 1) and q2.shape == (B, 1)
    assert jnp.allclose(q1, r1, atol=1e-2, rtol=1e-2)
    assert jnp.allclose(q2, r2, atol=1e-2, rtol=1e-2)

    print("KERNEL_OK")
</pallas_src>

<mosaic_0001>
module attributes {stable_mosaic.version = 11 : i64} {
  func.func @_critic_kernel(%arg0: i32, %arg1: memref<16x64xbf16, #tpu.memory_space<vmem>>, %arg2: memref<16x8xbf16, #tpu.memory_space<vmem>>, %arg3: memref<64x32xbf16, #tpu.memory_space<vmem>>, %arg4: memref<1x32xf32, #tpu.memory_space<vmem>>, %arg5: memref<1x32xf32, #tpu.memory_space<vmem>>, %arg6: memref<1x32xf32, #tpu.memory_space<vmem>>, %arg7: memref<32x64xbf16, #tpu.memory_space<vmem>>, %arg8: memref<8x64xbf16, #tpu.memory_space<vmem>>, %arg9: memref<1x64xf32, #tpu.memory_space<vmem>>, %arg10: memref<64x64xbf16, #tpu.memory_space<vmem>>, %arg11: memref<1x64xf32, #tpu.memory_space<vmem>>, %arg12: memref<64x2xbf16, #tpu.memory_space<vmem>>, %arg13: memref<1x2xf32, #tpu.memory_space<vmem>>, %arg14: memref<16x2xf32, #tpu.memory_space<vmem>>) attributes {dimension_semantics = [#tpu.dimension_semantics<parallel>], iteration_bounds = array<i64: 1>, scalar_prefetch = 0 : i64, scratch_operands = 0 : i64, tpu.core_type = #tpu.core_type<tc>, window_params = [{transform_indices = @transform_0, window_bounds = array<i64: 16, 64>}, {transform_indices = @transform_1, window_bounds = array<i64: 16, 8>}, {pipeline_mode = #tpu.pipeline_mode<synchronous>, transform_indices = @transform_2, window_bounds = array<i64: 64, 32>}, {pipeline_mode = #tpu.pipeline_mode<synchronous>, transform_indices = @transform_3, window_bounds = array<i64: 1, 32>}, {pipeline_mode = #tpu.pipeline_mode<synchronous>, transform_indices = @transform_4, window_bounds = array<i64: 1, 32>}, {pipeline_mode = #tpu.pipeline_mode<synchronous>, transform_indices = @transform_5, window_bounds = array<i64: 1, 32>}, {pipeline_mode = #tpu.pipeline_mode<synchronous>, transform_indices = @transform_6, window_bounds = array<i64: 32, 64>}, {pipeline_mode = #tpu.pipeline_mode<synchronous>, transform_indices = @transform_7, window_bounds = array<i64: 8, 64>}, {pipeline_mode = #tpu.pipeline_mode<synchronous>, transform_indices = @transform_8, window_bounds = array<i64: 1, 64>}, {pipeline_mode = #tpu.pipeline_mode<synchronous>, transform_indices = @transform_9, window_bounds = array<i64: 64, 64>}, {pipeline_mode = #tpu.pipeline_mode<synchronous>, transform_indices = @transform_10, window_bounds = array<i64: 1, 64>}, {pipeline_mode = #tpu.pipeline_mode<synchronous>, transform_indices = @transform_11, window_bounds = array<i64: 64, 2>}, {pipeline_mode = #tpu.pipeline_mode<synchronous>, transform_indices = @transform_12, window_bounds = array<i64: 1, 2>}, {transform_indices = @transform_13, window_bounds = array<i64: 16, 2>}]} {
    %c0 = arith.constant 0 : index
    %c0_0 = arith.constant 0 : index
    %0 = vector.load %arg1[%c0, %c0_0] : memref<16x64xbf16, #tpu.memory_space<vmem>>, vector<16x64xbf16>
    %c0_1 = arith.constant 0 : index
    %c0_2 = arith.constant 0 : index
    %1 = vector.load %arg2[%c0_1, %c0_2] : memref<16x8xbf16, #tpu.memory_space<vmem>>, vector<16x8xbf16>
    %c0_3 = arith.constant 0 : index
    %c0_4 = arith.constant 0 : index
    %2 = vector.load %arg3[%c0_3, %c0_4] : memref<64x32xbf16, #tpu.memory_space<vmem>>, vector<64x32xbf16>
    %cst = arith.constant dense<0.000000e+00> : vector<16x32xf32>
    %3 = tpu.matmul %0, %2, %cst {dimension_numbers = #tpu.dot_dimension_numbers<[1], [0], [0], [1], [0, 0, 1, 1], [], []>} : vector<16x64xbf16>, vector<64x32xbf16>, vector<16x32xf32> -> vector<16x32xf32>
    %c0_5 = arith.constant 0 : index
    %c0_6 = arith.constant 0 : index
    %4 = vector.load %arg4[%c0_5, %c0_6] : memref<1x32xf32, #tpu.memory_space<vmem>>, vector<1x32xf32>
    %5 = vector.broadcast %4 : vector<1x32xf32> to vector<16x32xf32>
    %6 = arith.addf %3, %5 : vector<16x32xf32>
    %cst_7 = arith.constant dense<0.000000e+00> : vector<16xf32>
    %7 = vector.multi_reduction <add>, %6, %cst_7 [1] : vector<16x32xf32> to vector<16xf32>
    %8 = vector.shape_cast %7 : vector<16xf32> to vector<16x1xf32>
    %cst_8 = arith.constant 3.200000e+01 : f32
    %9 = vector.broadcast %cst_8 : f32 to vector<16x1xf32>
    %10 = arith.divf %8, %9 : vector<16x1xf32>
    %11 = arith.mulf %6, %6 : vector<16x32xf32>
    %cst_9 = arith.constant dense<0.000000e+00> : vector<16xf32>
    %12 = vector.multi_reduction <add>, %11, %cst_9 [1] : vector<16x32xf32> to vector<16xf32>
    %13 = vector.shape_cast %12 : vector<16xf32> to vector<16x1xf32>
    %cst_10 = arith.constant 3.200000e+01 : f32
    %14 = vector.broadcast %cst_10 : f32 to vector<16x1xf32>
    %15 = arith.divf %13, %14 : vector<16x1xf32>
    %16 = arith.mulf %10, %10 : vector<16x1xf32>
    %17 = arith.subf %15, %16 : vector<16x1xf32>
    %cst_11 = arith.constant 0.000000e+00 : f32
    %18 = vector.broadcast %cst_11 : f32 to vector<16x1xf32>
    %19 = arith.maximumf %17, %18 : vector<16x1xf32>
    %20 = vector.broadcast %10 : vector<16x1xf32> to vector<16x32xf32>
    %21 = arith.subf %6, %20 : vector<16x32xf32>
    %cst_12 = arith.constant 9.99999974E-6 : f32
    %22 = vector.broadcast %cst_12 : f32 to vector<16x1xf32>
    %23 = arith.addf %19, %22 : vector<16x1xf32>
    %24 = math.rsqrt %23 : vector<16x1xf32>
    %25 = vector.broadcast %24 : vector<16x1xf32> to vector<16x32xf32>
    %26 = arith.mulf %21, %25 : vector<16x32xf32>
    %c0_13 = arith.constant 0 : index
    %c0_14 = arith.constant 0 : index
    %27 = vector.load %arg5[%c0_13, %c0_14] : memref<1x32xf32, #tpu.memory_space<vmem>>, vector<1x32xf32>
    %28 = vector.broadcast %27 : vector<1x32xf32> to vector<16x32xf32>
    %29 = arith.mulf %26, %28 : vector<16x32xf32>
    %c0_15 = arith.constant 0 : index
    %c0_16 = arith.constant 0 : index
    %30 = vector.load %arg6[%c0_15, %c0_16] : memref<1x32xf32, #tpu.memory_space<vmem>>, vector<1x32xf32>
    %31 = vector.broadcast %30 : vector<1x32xf32> to vector<16x32xf32>
    %32 = arith.addf %29, %31 : vector<16x32xf32>
    %33 = math.tanh %32 : vector<16x32xf32>
    %34 = arith.truncf %33 : vector<16x32xf32> to vector<16x32xbf16>
    %c0_17 = arith.constant 0 : index
    %c0_18 = arith.constant 0 : index
    %35 = vector.load %arg7[%c0_17, %c0_18] : memref<32x64xbf16, #tpu.memory_space<vmem>>, vector<32x64xbf16>
    %cst_19 = arith.constant dense<0.000000e+00> : vector<16x64xf32>
    %36 = tpu.matmul %34, %35, %cst_19 {dimension_numbers = #tpu.dot_dimension_numbers<[1], [0], [0], [1], [0, 0, 1, 1], [], []>} : vector<16x32xbf16>, vector<32x64xbf16>, vector<16x64xf32> -> vector<16x64xf32>
    %c0_20 = arith.constant 0 : index
    %c0_21 = arith.constant 0 : index
    %37 = vector.load %arg8[%c0_20, %c0_21] : memref<8x64xbf16, #tpu.memory_space<vmem>>, vector<8x64xbf16>
    %cst_22 = arith.constant dense<0.000000e+00> : vector<16x64xf32>
    %38 = tpu.matmul %1, %37, %cst_22 {dimension_numbers = #tpu.dot_dimension_numbers<[1], [0], [0], [1], [0, 0, 1, 1], [], []>} : vector<16x8xbf16>, vector<8x64xbf16>, vector<16x64xf32> -> vector<16x64xf32>
    %39 = arith.addf %36, %38 : vector<16x64xf32>
    %c0_23 = arith.constant 0 : index
    %c0_24 = arith.constant 0 : index
    %40 = vector.load %arg9[%c0_23, %c0_24] : memref<1x64xf32, #tpu.memory_space<vmem>>, vector<1x64xf32>
    %41 = vector.broadcast %40 : vector<1x64xf32> to vector<16x64xf32>
    %42 = arith.addf %39, %41 : vector<16x64xf32>
    %cst_25 = arith.constant 0.000000e+00 : f32
    %43 = vector.broadcast %cst_25 : f32 to vector<16x64xf32>
    %44 = arith.maximumf %42, %43 : vector<16x64xf32>
    %45 = arith.truncf %44 : vector<16x64xf32> to vector<16x64xbf16>
    %c0_26 = arith.constant 0 : index
    %c0_27 = arith.constant 0 : index
    %46 = vector.load %arg10[%c0_26, %c0_27] : memref<64x64xbf16, #tpu.memory_space<vmem>>, vector<64x64xbf16>
    %cst_28 = arith.constant dense<0.000000e+00> : vector<16x64xf32>
    %47 = tpu.matmul %45, %46, %cst_28 {dimension_numbers = #tpu.dot_dimension_numbers<[1], [0], [0], [1], [0, 0, 1, 1], [], []>} : vector<16x64xbf16>, vector<64x64xbf16>, vector<16x64xf32> -> vector<16x64xf32>
    %c0_29 = arith.constant 0 : index
    %c0_30 = arith.constant 0 : index
    %48 = vector.load %arg11[%c0_29, %c0_30] : memref<1x64xf32, #tpu.memory_space<vmem>>, vector<1x64xf32>
    %49 = vector.broadcast %48 : vector<1x64xf32> to vector<16x64xf32>
    %50 = arith.addf %47, %49 : vector<16x64xf32>
    %cst_31 = arith.constant 0.000000e+00 : f32
    %51 = vector.broadcast %cst_31 : f32 to vector<16x64xf32>
    %52 = arith.maximumf %50, %51 : vector<16x64xf32>
    %53 = arith.truncf %52 : vector<16x64xf32> to vector<16x64xbf16>
    %c0_32 = arith.constant 0 : index
    %c0_33 = arith.constant 0 : index
    %54 = vector.load %arg12[%c0_32, %c0_33] : memref<64x2xbf16, #tpu.memory_space<vmem>>, vector<64x2xbf16>
    %cst_34 = arith.constant dense<0.000000e+00> : vector<16x2xf32>
    %55 = tpu.matmul %53, %54, %cst_34 {dimension_numbers = #tpu.dot_dimension_numbers<[1], [0], [0], [1], [0, 0, 1, 1], [], []>} : vector<16x64xbf16>, vector<64x2xbf16>, vector<16x2xf32> -> vector<16x2xf32>
    %c0_35 = arith.constant 0 : index
    %c0_36 = arith.constant 0 : index
    %56 = vector.load %arg13[%c0_35, %c0_36] : memref<1x2xf32, #tpu.memory_space<vmem>>, vector<1x2xf32>
    %57 = vector.broadcast %56 : vector<1x2xf32> to vector<16x2xf32>
    %58 = arith.addf %55, %57 : vector<16x2xf32>
    %c0_37 = arith.constant 0 : index
    %c0_38 = arith.constant 0 : index
    %59 = vector.load %arg14[%c0_37, %c0_38] : memref<16x2xf32, #tpu.memory_space<vmem>>, vector<16x2xf32>
    tpu.vector_store %arg14[%c0_37, %c0_38], %58 {strides = array<i32>} : memref<16x2xf32, #tpu.memory_space<vmem>>, vector<16x2xf32>,
    return
  }
  func.func @transform_0(%arg0: i32) -> (i32, i32) {
    %c0_i32 = arith.constant 0 : i32
    %c0_i32_0 = arith.constant 0 : i32
    return %arg0, %c0_i32 : i32, i32
  }
  func.func @transform_1(%arg0: i32) -> (i32, i32) {
    %c0_i32 = arith.constant 0 : i32
    %c0_i32_0 = arith.constant 0 : i32
    return %arg0, %c0_i32 : i32, i32
  }
  func.func @transform_2(%arg0: i32) -> (i32, i32) {
    %c0_i32 = arith.constant 0 : i32
    %c0_i32_0 = arith.constant 0 : i32
    %c0_i32_1 = arith.constant 0 : i32
    return %c0_i32, %c0_i32_0 : i32, i32
  }
  func.func @transform_3(%arg0: i32) -> (i32, i32) {
    %c0_i32 = arith.constant 0 : i32
    %c0_i32_0 = arith.constant 0 : i32
    %c0_i32_1 = arith.constant 0 : i32
    return %c0_i32, %c0_i32_0 : i32, i32
  }
  func.func @transform_4(%arg0: i32) -> (i32, i32) {
    %c0_i32 = arith.constant 0 : i32
    %c0_i32_0 = arith.constant 0 : i32
    %c0_i32_1 = arith.constant 0 : i32
    return %c0_i32, %c0_i32_0 : i32, i32
  }
  func.func @transform_5(%arg0: i32) -> (i32, i32) {
    %c0_i32 = arith.constant 0 : i32
    %c0_i32_0 = arith.constant 0 : i32
    %c0_i32_1 = arith.constant 0 : i32
    return %c0_i32, %c0_i32_0 : i32, i32
  }
  func.func @transform_6(%arg0: i32) -> (i32, i32) {
    %c0_i32 = arith.constant 0 : i32
    %c0_i32_0 = arith.constant 0 : i32
    %c0_i32_1 = arith.constant 0 : i32
    return %c0_i32, %c0_i32_0 : i32, i32
  }
  func.func @transform_7(%arg0: i32) -> (i32, i32) {
    %c0_i32 = arith.constant 0 : i32
    %c0_i32_0 = arith.constant 0 : i32
    %c0_i32_1 = arith.constant 0 : i32
    return %c0_i32, %c0_i32_0 : i32, i32
  }
  func.func @transform_8(%arg0: i32) -> (i32, i32) {
    %c0_i32 = arith.constant 0 : i32
    %c0_i32_0 = arith.constant 0 : i32
    %c0_i32_1 = arith.constant 0 : i32
    return %c0_i32, %c0_i32_0 : i32, i32
  }
  func.func @transform_9(%arg0: i32) -> (i32, i32) {
    %c0_i32 = arith.constant 0 : i32
    %c0_i32_0 = arith.constant 0 : i32
    %c0_i32_1 = arith.constant 0 : i32
    return %c0_i32, %c0_i32_0 : i32, i32
  }
  func.func @transform_10(%arg0: i32) -> (i32, i32) {
    %c0_i32 = arith.constant 0 : i32
    %c0_i32_0 = arith.constant 0 : i32
    %c0_i32_1 = arith.constant 0 : i32
    return %c0_i32, %c0_i32_0 : i32, i32
  }
  func.func @transform_11(%arg0: i32) -> (i32, i32) {
    %c0_i32 = arith.constant 0 : i32
    %c0_i32_0 = arith.constant 0 : i32
    %c0_i32_1 = arith.constant 0 : i32
    return %c0_i32, %c0_i32_0 : i32, i32
  }
  func.func @transform_12(%arg0: i32) -> (i32, i32) {
    %c0_i32 = arith.constant 0 : i32
    %c0_i32_0 = arith.constant 0 : i32
    %c0_i32_1 = arith.constant 0 : i32
    return %c0_i32, %c0_i32_0 : i32, i32
  }
  func.func @transform_13(%arg0: i32) -> (i32, i32) {
    %c0_i32 = arith.constant 0 : i32
    %c0_i32_0 = arith.constant 0 : i32
    return %arg0, %c0_i32 : i32, i32
  }
}

</mosaic_0001>

<bundles_post_ra>
// kernel: tpu_custom_call.1
= control target key start
LH: loop header
LB: loop body
LE: loop exit
PB: predicated region body
PF: predicated region fallthrough
CT: control target
= control target key end

     0   :  { %v619_v0 = vmov 0.0   ;;  %vm620_vm0 = vmmov 0   ;;  %vm93_vm1 = vcmask 523264   ;;  %vm138_vm2 = vcmask 261120   ;;  %s799_s2 = inlined_call_operand.vmem [shape: bf16[64,32], index: 2, kind: input, shape index: {}]   ;;  %s800_s0 = inlined_call_operand.vmem [shape: bf16[16,64], index: 0, kind: input, shape index: {}]   ;;  %s801_s3 = inlined_call_operand.vmem [shape: f32[1,32], index: 3, kind: input, shape index: {}]   ;;  %s802_s7 = inlined_call_operand.vmem [shape: bf16[8,64], index: 7, kind: input, shape index: {}]   ;;  %s803_s1 = inlined_call_operand.vmem [shape: bf16[16,8], index: 1, kind: input, shape index: {}]   ;;  %s804_s6 = inlined_call_operand.vmem [shape: bf16[32,64], index: 6, kind: input, shape index: {}]   ;;  %s805_s9 = inlined_call_operand.vmem [shape: bf16[64,64], index: 9, kind: input, shape index: {}]   ;;  %s806_s4 = inlined_call_operand.vmem [shape: f32[1,32], index: 4, kind: input, shape index: {}]   ;;  %s807_s5 = inlined_call_operand.vmem [shape: f32[1,32], index: 5, kind: input, shape index: {}]   ;;  %s808_s11 = inlined_call_operand.vmem [shape: bf16[64,2], index: 11, kind: input, shape index: {}]   ;;  %s809_s8 = inlined_call_operand.vmem [shape: f32[1,64], index: 8, kind: input, shape index: {}]   ;;  %s810_s10 = inlined_call_operand.vmem [shape: f32[1,64], index: 10, kind: input, shape index: {}]   ;;  %s811_s12 = inlined_call_operand.vmem [shape: f32[1,2], index: 12, kind: input, shape index: {}]   ;;  %s812_s13 = inlined_call_operand.vmem [shape: f32[16,2], index: 13, kind: output, shape index: {}]  }
   0x1   :  { %543 = vmatprep.subr.bf16.mxu0 %v619_v0  ;;  %v595_v1 = vld [vmem:[%s799_s2 + $0x18] sm:$0xff]   ;;  %551 = vmatprep.mubr.msk.bf16.mxu0 %vm620_vm0, %v619_v0  ;;  %v596_v2 = vld [vmem:[%s799_s2 + $0x10] sm:$0xff]   ;;  %v597_v3 = vld [vmem:[%s799_s2 + $0x8] sm:$0xff]   ;;  %vm207_vm3 = vcmask 1043456   ;;  %vm203_vm4 = vcmask 64512   ;;  %vm489_vm5 = vcmask 15360  }
   0x2   :  { %555 = vmatprep.subr.bf16.mxu1 %v619_v0  ;;  %557 = vmatprep.mubr.msk.bf16.mxu1 %vm620_vm0, %v619_v0  ;;  %v598_v4 = vld [vmem:[%s799_s2] sm:$0xff]   ;;  %v601_v22 = vld [vmem:[%s804_s6 + $0x8] sm:$0xff]   ;;  %v603_v54 = vld [vmem:[%s805_s9 + $0x18] sm:$0xff]  }
   0x3   :  { %544 = vmatpush3.bf16.msra.mxu0 %v595_v1  ;;  %v599_v5 = vld [vmem:[%s800_s0] sm:$0xff]   ;;  %v604_v60 = vld [vmem:[%s805_s9 + $0x10] sm:$0xff]   ;;  %v605_v61 = vld [vmem:[%s805_s9 + $0x8] sm:$0xff]  }
   0x4   :  { %545 = vmatprep.subr.bf16.mxu0 %v619_v0  ;;  %v496_v6 = vld [vmem:[%s801_s3] ss:$0 sm:$0xff]  ;;  %v607_v63 = vld [vmem:[%s808_s11 + $0x18] sm:$0xff]  }
   0x5   :  { %v197_v19 = vld [vmem:[%s802_s7] sm:$0xf] }
   0x6   :  { %v209_v20 = vsel %vm207_vm3, %v197_v19, 0  ;;  %v600_v21 = vld [vmem:[%s803_s1] sm:$0xff]  }
   0x7   :  { %546 = vmatpush3.bf16.msra.mxu0 %v596_v2  ;;  %556 = vmatpush3.bf16.msra.mxu1 %v209_v20  ;;  %v602_v23 = vld [vmem:[%s804_s6] sm:$0xff]  }
   0x8   :  { %547 = vmatprep.subr.bf16.mxu0 %v619_v0  ;;  %561 = vmatprep.subr.bf16.mxu1 %v619_v0  ;;  %v503_v42 = vld [vmem:[%s806_s4] ss:$0 sm:$0xff] }
   0x9   :  { %v504_v44 = vld [vmem:[%s807_s5] ss:$0 sm:$0xff] }
   0xa   :  { %558 = vmatmul.mubr.msk.bf16.vlgmr.msra.gmra.mxu1 %vm203_vm4, %v600_v21  ;;  %v606_v62 = vld [vmem:[%s805_s9] sm:$0xff]  }
   0xb   :  { %548 = vmatpush3.bf16.msra.mxu0 %v597_v3  ;;  %562 = vmatpush3.bf16.msra.mxu1 %v601_v22  ;;  %v510_v3 = vld [vmem:[%s809_s8] ss:$0 sm:$0xff] }
   0xc   :  { %549 = vmatprep.subr.bf16.mxu0 %v619_v0  ;;  %565 = vmatprep.mubr.msk.bf16.mxu1 %vm620_vm0, %v619_v0 }
   0xd   :  { %563 = vmatprep.subr.bf16.mxu1 %v619_v0 }
   0xf   :  { %550 = vmatpush3.bf16.msra.mxu0 %v598_v4  ;;  %564 = vmatpush3.bf16.msra.mxu1 %v602_v23 }
  0x10   :  { %581 = vmatprep.subr.bf16.mxu0 %v619_v0  ;;  %569 = vmatprep.subr.bf16.mxu1 %v619_v0 }
  0x12   :  { %552 = vmatmul.mubr.msk.bf16.vlgmr.msra.gmra.mxu0 %vm93_vm1, %v599_v5 }
  0x13   :  { %589 = vmatprep.mubr.msk.bf16.mxu0 %vm620_vm0, %v619_v0  ;;  %582 = vmatpush3.bf16.msra.mxu0 %v607_v63 }
  0x14   :  { %583 = vmatprep.subr.bf16.mxu0 %v619_v0 }
  0xca   :  { %v245_v56 = vpop.f32.mrf.mxu1 }
  0xcc   :  { %v559_v57 = vpop.f32.mrf.mxu1 }
  0xce   :  { %v248_v58 = vpop.f32.mrf.mxu1 }
  0xd0   :  { %v560_v59 = vpop.f32.mrf.mxu1 }
  0xd2   :  { %v131_v7 = vpop.f32.mrf.mxu0 }
  0xd3   :  { %v132_v8 = vadd.f32 %v496_v6, %v131_v7 }
  0xd4   :  { %v553_v9 = vpop.f32.mrf.mxu0 }
  0xd5   :  { %v139_v10 = vsel %vm138_vm2, %v132_v8, 0.0  ;;  %v148_v11 = vmul.f32 %v132_v8, %v132_v8 }
  0xd6   :  { %140 = vadd.xlane.f32.xlu0 %v139_v10  ;;  %v134_v12 = vpop.f32.mrf.mxu0 }
  0xd7   :  { %v135_v13 = vadd.f32 %v496_v6, %v134_v12  ;;  %v150_v14 = vsel %vm138_vm2, %v148_v11, 0.0 }
  0xd8   :  { %151 = vadd.xlane.f32.xlu1 %v150_v14  ;;  %v554_v15 = vpop.f32.mrf.mxu0  ;;  %v609_v14 = vld [vmem:[%s808_s11 + $0x8] sm:$0xff]  }
  0xd9   :  { %v142_v16 = vsel %vm138_vm2, %v135_v13, 0.0  ;;  %v149_v17 = vmul.f32 %v135_v13, %v135_v13  ;;  %v610_v15 = vld [vmem:[%s808_s11] sm:$0xff]  }
  0xda   :  { %143 = vadd.xlane.f32.xlu0 %v142_v16  ;;  %v511_v16 = vld [vmem:[%s810_s10] ss:$0 sm:$0xff] }
  0xdb   :  { %v153_v18 = vsel %vm138_vm2, %v149_v17, 0.0 }
  0xdc   :  { %154 = vadd.xlane.f32.xlu1 %v153_v18 }
 0x15f   :  { %v141_v24 = vpop.xlane.xlu0 %140 }
 0x160   :  { %v146_v25 = vmul.f32 0.03125, %v141_v24 }
 0x161   :  { %v152_v26 = vpop.xlane.xlu1 %151 }
 0x162   :  { %v158_v27 = vmul.f32 %v146_v25, %v146_v25  ;;  %v156_v28 = vmul.f32 0.03125, %v152_v26  ;;  %v164_v40 = vsub.f32 %v132_v8, %v146_v25 }
 0x163   :  { %v144_v29 = vpop.xlane.xlu0 %143 }
 0x164   :  { %v160_v30 = vsub.f32 %v156_v28, %v158_v27  ;;  %v147_v31 = vmul.f32 0.03125, %v144_v29 }
 0x165   :  { %v155_v32 = vpop.xlane.xlu1 %154 }
 0x166   :  { %v162_v33 = vmax.f32 %v160_v30, 0.0  ;;  %v159_v34 = vmul.f32 %v147_v31, %v147_v31  ;;  %v157_v35 = vmul.f32 0.03125, %v155_v32  ;;  %v165_v46 = vsub.f32 %v135_v13, %v147_v31  ;;  %v608_v13 = vld [vmem:[%s808_s11 + $0x10] sm:$0xff]  }
 0x167   :  { %584 = vmatpush3.bf16.msra.mxu0 %v608_v13 }
 0x168   :  { %v166_v36 = vadd.f32 1e-05, %v162_v33  ;;  %v161_v37 = vsub.f32 %v157_v35, %v159_v34  ;;  %585 = vmatprep.subr.bf16.mxu0 %v619_v0 }
 0x16a   :  { %611 = vrsqrt.f32 %v166_v36  ;;  %v163_v38 = vmax.f32 %v161_v37, 0.0 }
 0x16b   :  { %586 = vmatpush3.bf16.msra.mxu0 %v609_v14 }
 0x16c   :  { %v167_v39 = vadd.f32 1e-05, %v163_v38  ;;  %587 = vmatprep.subr.bf16.mxu0 %v619_v0 }
 0x16e   :  { %613 = vrsqrt.f32 %v167_v39 }
 0x16f   :  { %588 = vmatpush3.bf16.msra.mxu0 %v610_v15 }
 0x177   :  { %v612_v41 = vpop.eup %611 }
 0x178   :  { %v170_v43 = vmul.f32 %v612_v41, %v164_v40 }
 0x17a   :  { %v179_v45 = vmul.f32 %v503_v42, %v170_v43 }
 0x17b   :  { %v614_v47 = vpop.eup %613 }
 0x17c   :  { %v171_v48 = vmul.f32 %v614_v47, %v165_v46  ;;  %v188_v49 = vadd.f32 %v504_v44, %v179_v45 }
 0x17e   :  { %v180_v50 = vmul.f32 %v503_v42, %v171_v48  ;;  %615 = vtanh.f32 %v188_v49 }
 0x180   :  { %v189_v51 = vadd.f32 %v504_v44, %v180_v50 }
 0x182   :  { %617 = vtanh.f32 %v189_v51 }
 0x18b   :  { %v616_v52 = vpop.eup %615 }
 0x18f   :  { %v618_v53 = vpop.eup %617 }
 0x190   :  { %v192_v55 = vpack.c.bf16 %v618_v53, %v616_v52 }
 0x192   :  { %566 = vmatmul.mubr.msk.bf16.vlgmr.msra.gmra.mxu1 %vm138_vm2, %v192_v55 }
 0x193   :  { %570 = vmatpush3.bf16.msra.mxu1 %v603_v54  ;;  %577 = vmatprep.mubr.msk.bf16.mxu1 %vm620_vm0, %v619_v0 }
 0x194   :  { %571 = vmatprep.subr.bf16.mxu1 %v619_v0 }
 0x197   :  { %572 = vmatpush3.bf16.msra.mxu1 %v604_v60 }
 0x198   :  { %573 = vmatprep.subr.bf16.mxu1 %v619_v0 }
 0x19b   :  { %574 = vmatpush3.bf16.msra.mxu1 %v605_v61 }
 0x19c   :  { %575 = vmatprep.subr.bf16.mxu1 %v619_v0  ;;  %v517_v0 = vld [vmem:[%s811_s12] ss:$0 sm:$0xff] }
 0x19f   :  { %576 = vmatpush3.bf16.msra.mxu1 %v606_v62 }
 0x252   :  { %v301_v1 = vpop.f32.mrf.mxu1 }
 0x253   :  { %v302_v2 = vadd.f32 %v301_v1, %v245_v56 }
 0x254   :  { %v567_v4 = vpop.f32.mrf.mxu1 }
 0x255   :  { %v315_v6 = vadd.f32 %v510_v3, %v302_v2 }
 0x256   :  { %v304_v5 = vpop.f32.mrf.mxu1 }
 0x257   :  { %v305_v7 = vadd.f32 %v304_v5, %v248_v58  ;;  %v317_v10 = vmax.f32 %v315_v6, 0.0 }
 0x258   :  { %v568_v8 = vpop.f32.mrf.mxu1 }
 0x259   :  { %v316_v9 = vadd.f32 %v510_v3, %v305_v7 }
 0x25b   :  { %v318_v11 = vmax.f32 %v316_v9, 0.0 }
 0x25d   :  { %v319_v12 = vpack.c.bf16 %v318_v11, %v317_v10 }
 0x25f   :  { %578 = vmatmul.mubr.msk.bf16.vlgmr.msra.gmra.mxu1 %vm93_vm1, %v319_v12 }
 0x31f   :  { %v396_v17 = vpop.f32.mrf.mxu1 }
 0x320   :  { %v397_v19 = vadd.f32 %v511_v16, %v396_v17 }
 0x321   :  { %v579_v18 = vpop.f32.mrf.mxu1 }
 0x322   :  { %v403_v23 = vmax.f32 %v397_v19, 0.0 }
 0x323   :  { %v399_v20 = vpop.f32.mrf.mxu1 }
 0x324   :  { %v400_v21 = vadd.f32 %v511_v16, %v399_v20 }
 0x325   :  { %v580_v22 = vpop.f32.mrf.mxu1 }
 0x326   :  { %v404_v24 = vmax.f32 %v400_v21, 0.0 }
 0x328   :  { %v405_v25 = vpack.c.bf16 %v404_v24, %v403_v23 }
 0x32a   :  { %590 = vmatmul.mubr.msk.bf16.vlgmr.msra.gmra.mxu0 %vm93_vm1, %v405_v25 }
 0x3ea   :  { %v482_v26 = vpop.f32.mrf.mxu0 }
 0x3eb   :  { %v483_v27 = vadd.f32 %v517_v0, %v482_v26 }
 0x3ec   :  { %v591_v28 = vpop.f32.mrf.mxu0 }
 0x3ed   :  { %490 = vst.msk [vmem:[%s812_s13] sm:$0xff] %vm489_vm5, %v483_v27 }
 0x3ee   :  { %v485_v29 = vpop.f32.mrf.mxu0 }
 0x3ef   :  { %v486_v30 = vadd.f32 %v517_v0, %v485_v29 }
 0x3f0   :  { %v592_v31 = vpop.f32.mrf.mxu0 }
 0x3f1   :  { %491 = vst.msk [vmem:[%s812_s13 + $0x8] sm:$0xff] %vm489_vm5, %v486_v30 }

</bundles_post_ra>
